<compile_context>
chip_gen: v7x
topology: tpu7x:2x2x1
jax: 0.10.0
libtpu: 0.0.40
codegen_flags: <defaults>
</compile_context>

<pallas_src>
import functools
import math

import jax
import jax.numpy as jnp
from jax.experimental import pallas as pl
from jax.experimental.pallas import tpu as pltpu


N_FEATURES = 8
N_HIDDEN = 16
N_ACTIONS = 4


def reinforce_mlp_kernel(x_ref,
                         w1_ref, b1_ref,
                         w2_ref, b2_ref,
                         w3_ref, b3_ref,
                         w4_ref, b4_ref,
                         o_ref):
    """One batch tile: 4 matmuls + ReLUs + numerically-stable log-softmax."""
    x = x_ref[...]  # (TILE_B, 8) float32

    h = jnp.dot(x, w1_ref[...], preferred_element_type=jnp.float32) + b1_ref[...]
    h = jnp.maximum(h, 0.0)

    h = jnp.dot(h, w2_ref[...], preferred_element_type=jnp.float32) + b2_ref[...]
    h = jnp.maximum(h, 0.0)

    h = jnp.dot(h, w3_ref[...], preferred_element_type=jnp.float32) + b3_ref[...]
    h = jnp.maximum(h, 0.0)

    logits = jnp.dot(h, w4_ref[...], preferred_element_type=jnp.float32) + b4_ref[...]

    # LogSoftmax along dim=1 (action axis), max-shifted for stability.
    m = jnp.max(logits, axis=1, keepdims=True)
    shifted = logits - m
    lse = jnp.log(jnp.sum(jnp.exp(shifted), axis=1, keepdims=True))
    o_ref[...] = (shifted - lse).astype(o_ref.dtype)


def _round_up(n, m):
    return ((n + m - 1) // m) * m


@functools.partial(jax.jit, static_argnames=("tile_b",))
def reinforce_forward(x, params, *, tile_b=2048):
    """x: (B, 8) float32.  params: list of (W, b) pairs.  Returns (B, 4) f32."""
    (w1, b1), (w2, b2), (w3, b3), (w4, b4) = params
    B = x.shape[0]

    # Batch tile: large enough to stream x near HBM roofline for big rollout
    # batches, clamped (to a multiple of 8 sublanes) for tiny batches.  The
    # per-step VMEM footprint (tile 2048: 64 KiB x + 128 KiB activations +
    # ~2 KiB weights, x2 for double-buffering) fits easily under the default
    # scoped-VMEM limit on v5e/v6e/v7x alike.
    tb = min(tile_b, max(8, _round_up(B, 8)))
    grid = (pl.cdiv(B, tb),)

    # Weights/biases are pinned to block (0, 0) so they stay VMEM-resident
    # across all grid steps; only x and the output are streamed.
    def pinned(shape):
        return pl.BlockSpec(shape, lambda i: (0, 0))

    weight_bytes = sum(int(a.size) * a.dtype.itemsize
                       for a in (w1, b1, w2, b2, w3, b3, w4, b4))
    cost = pl.CostEstimate(
        flops=2 * B * (N_FEATURES * N_HIDDEN
                       + 2 * N_HIDDEN * N_HIDDEN
                       + N_HIDDEN * N_ACTIONS),
        transcendentals=B * (N_ACTIONS + 1),  # exp per action + log per row
        bytes_accessed=B * (N_FEATURES + N_ACTIONS) * 4 + weight_bytes,
    )

    return pl.pallas_call(
        reinforce_mlp_kernel,
        out_shape=jax.ShapeDtypeStruct((B, N_ACTIONS), jnp.float32),
        grid=grid,
        in_specs=[
            pl.BlockSpec((tb, N_FEATURES), lambda i: (i, 0)),  # x: streamed
            pinned(w1.shape), pinned(b1.shape),
            pinned(w2.shape), pinned(b2.shape),
            pinned(w3.shape), pinned(b3.shape),
            pinned(w4.shape), pinned(b4.shape),
        ],
        out_specs=pl.BlockSpec((tb, N_ACTIONS), lambda i: (i, 0)),
        compiler_params=pltpu.CompilerParams(
            dimension_semantics=("parallel",),  # megacore sharding on v7x
        ),
        cost_estimate=cost,
    )(x, w1, b1, w2, b2, w3, b3, w4, b4)


def init_params(key):
    """Deterministic init mimicking PyTorch Linear default U[-1/sqrt(fan_in), +]."""
    dims = [(N_FEATURES, N_HIDDEN), (N_HIDDEN, N_HIDDEN),
            (N_HIDDEN, N_HIDDEN), (N_HIDDEN, N_ACTIONS)]
    params = []
    for (fan_in, fan_out) in dims:
        key, kw, kb = jax.random.split(key, 3)
        bound = 1.0 / math.sqrt(fan_in)
        # Stored as (in, out) so the kernel does x @ W.
        w = jax.random.uniform(kw, (fan_in, fan_out), jnp.float32, -bound, bound)
        b = jax.random.uniform(kb, (1, fan_out), jnp.float32, -bound, bound)
        params.append((w, b))
    return params


def ref_forward(x, params):
    """Pure-JAX reference of the same math."""
    (w1, b1), (w2, b2), (w3, b3), (w4, b4) = params
    h = jnp.maximum(x @ w1 + b1, 0.0)
    h = jnp.maximum(h @ w2 + b2, 0.0)
    h = jnp.maximum(h @ w3 + b3, 0.0)
    logits = h @ w4 + b4
    return jax.nn.log_softmax(logits, axis=1)


if __name__ == "__main__":
    key = jax.random.PRNGKey(0)
    key, kx = jax.random.split(key)

    params = init_params(key)

    # Small batch (single policy query) — consistent with the module spec.
    B = 2
    x = jax.random.normal(kx, (B, N_FEATURES), jnp.float32)
    out = jax.block_until_ready(reinforce_forward(x, params))
    ref = jax.block_until_ready(ref_forward(x, params))
    assert out.shape == (B, N_ACTIONS)
    assert jnp.allclose(out, ref, atol=1e-5, rtol=1e-5), "mismatch vs reference (B=2)"

    # Larger, non-tile-aligned batch exercises the streaming grid + tail crop.
    B2 = 5000
    key, kx2 = jax.random.split(key)
    x2 = jax.random.normal(kx2, (B2, N_FEATURES), jnp.float32)
    out2 = jax.block_until_ready(reinforce_forward(x2, params))
    ref2 = jax.block_until_ready(ref_forward(x2, params))
    assert out2.shape == (B2, N_ACTIONS)
    assert jnp.allclose(out2, ref2, atol=1e-5, rtol=1e-5), "mismatch vs reference (B=5000)"

    print("KERNEL_OK")
</pallas_src>

<mosaic_0001>
module attributes {stable_mosaic.version = 11 : i64} {
  func.func @reinforce_mlp_kernel(%arg0: i32, %arg1: memref<8x8xf32, #tpu.memory_space<vmem>>, %arg2: memref<8x16xf32, #tpu.memory_space<vmem>>, %arg3: memref<1x16xf32, #tpu.memory_space<vmem>>, %arg4: memref<16x16xf32, #tpu.memory_space<vmem>>, %arg5: memref<1x16xf32, #tpu.memory_space<vmem>>, %arg6: memref<16x16xf32, #tpu.memory_space<vmem>>, %arg7: memref<1x16xf32, #tpu.memory_space<vmem>>, %arg8: memref<16x4xf32, #tpu.memory_space<vmem>>, %arg9: memref<1x4xf32, #tpu.memory_space<vmem>>, %arg10: memref<8x4xf32, #tpu.memory_space<vmem>>) attributes {dimension_semantics = [#tpu.dimension_semantics<parallel>], iteration_bounds = array<i64: 1>, scalar_prefetch = 0 : i64, scratch_operands = 0 : i64, tpu.core_type = #tpu.core_type<tc>, window_params = [{transform_indices = @transform_0, window_bounds = array<i64: 8, 8>}, {pipeline_mode = #tpu.pipeline_mode<synchronous>, transform_indices = @transform_1, window_bounds = array<i64: 8, 16>}, {pipeline_mode = #tpu.pipeline_mode<synchronous>, transform_indices = @transform_2, window_bounds = array<i64: 1, 16>}, {pipeline_mode = #tpu.pipeline_mode<synchronous>, transform_indices = @transform_3, window_bounds = array<i64: 16, 16>}, {pipeline_mode = #tpu.pipeline_mode<synchronous>, transform_indices = @transform_4, window_bounds = array<i64: 1, 16>}, {pipeline_mode = #tpu.pipeline_mode<synchronous>, transform_indices = @transform_5, window_bounds = array<i64: 16, 16>}, {pipeline_mode = #tpu.pipeline_mode<synchronous>, transform_indices = @transform_6, window_bounds = array<i64: 1, 16>}, {pipeline_mode = #tpu.pipeline_mode<synchronous>, transform_indices = @transform_7, window_bounds = array<i64: 16, 4>}, {pipeline_mode = #tpu.pipeline_mode<synchronous>, transform_indices = @transform_8, window_bounds = array<i64: 1, 4>}, {transform_indices = @transform_9, window_bounds = array<i64: 8, 4>}]} {
    %c0 = arith.constant 0 : index
    %c0_0 = arith.constant 0 : index
    %0 = vector.load %arg1[%c0, %c0_0] : memref<8x8xf32, #tpu.memory_space<vmem>>, vector<8x8xf32>
    %c0_1 = arith.constant 0 : index
    %c0_2 = arith.constant 0 : index
    %1 = vector.load %arg2[%c0_1, %c0_2] : memref<8x16xf32, #tpu.memory_space<vmem>>, vector<8x16xf32>
    %cst = arith.constant dense<0.000000e+00> : vector<8x16xf32>
    %2 = tpu.matmul %0, %1, %cst {dimension_numbers = #tpu.dot_dimension_numbers<[1], [0], [0], [1], [0, 0, 1, 1], [], []>} : vector<8x8xf32>, vector<8x16xf32>, vector<8x16xf32> -> vector<8x16xf32>
    %c0_3 = arith.constant 0 : index
    %c0_4 = arith.constant 0 : index
    %3 = vector.load %arg3[%c0_3, %c0_4] : memref<1x16xf32, #tpu.memory_space<vmem>>, vector<1x16xf32>
    %4 = vector.broadcast %3 : vector<1x16xf32> to vector<8x16xf32>
    %5 = arith.addf %2, %4 : vector<8x16xf32>
    %cst_5 = arith.constant 0.000000e+00 : f32
    %6 = vector.broadcast %cst_5 : f32 to vector<8x16xf32>
    %7 = arith.maximumf %5, %6 : vector<8x16xf32>
    %c0_6 = arith.constant 0 : index
    %c0_7 = arith.constant 0 : index
    %8 = vector.load %arg4[%c0_6, %c0_7] : memref<16x16xf32, #tpu.memory_space<vmem>>, vector<16x16xf32>
    %cst_8 = arith.constant dense<0.000000e+00> : vector<8x16xf32>
    %9 = tpu.matmul %7, %8, %cst_8 {dimension_numbers = #tpu.dot_dimension_numbers<[1], [0], [0], [1], [0, 0, 1, 1], [], []>} : vector<8x16xf32>, vector<16x16xf32>, vector<8x16xf32> -> vector<8x16xf32>
    %c0_9 = arith.constant 0 : index
    %c0_10 = arith.constant 0 : index
    %10 = vector.load %arg5[%c0_9, %c0_10] : memref<1x16xf32, #tpu.memory_space<vmem>>, vector<1x16xf32>
    %11 = vector.broadcast %10 : vector<1x16xf32> to vector<8x16xf32>
    %12 = arith.addf %9, %11 : vector<8x16xf32>
    %cst_11 = arith.constant 0.000000e+00 : f32
    %13 = vector.broadcast %cst_11 : f32 to vector<8x16xf32>
    %14 = arith.maximumf %12, %13 : vector<8x16xf32>
    %c0_12 = arith.constant 0 : index
    %c0_13 = arith.constant 0 : index
    %15 = vector.load %arg6[%c0_12, %c0_13] : memref<16x16xf32, #tpu.memory_space<vmem>>, vector<16x16xf32>
    %cst_14 = arith.constant dense<0.000000e+00> : vector<8x16xf32>
    %16 = tpu.matmul %14, %15, %cst_14 {dimension_numbers = #tpu.dot_dimension_numbers<[1], [0], [0], [1], [0, 0, 1, 1], [], []>} : vector<8x16xf32>, vector<16x16xf32>, vector<8x16xf32> -> vector<8x16xf32>
    %c0_15 = arith.constant 0 : index
    %c0_16 = arith.constant 0 : index
    %17 = vector.load %arg7[%c0_15, %c0_16] : memref<1x16xf32, #tpu.memory_space<vmem>>, vector<1x16xf32>
    %18 = vector.broadcast %17 : vector<1x16xf32> to vector<8x16xf32>
    %19 = arith.addf %16, %18 : vector<8x16xf32>
    %cst_17 = arith.constant 0.000000e+00 : f32
    %20 = vector.broadcast %cst_17 : f32 to vector<8x16xf32>
    %21 = arith.maximumf %19, %20 : vector<8x16xf32>
    %c0_18 = arith.constant 0 : index
    %c0_19 = arith.constant 0 : index
    %22 = vector.load %arg8[%c0_18, %c0_19] : memref<16x4xf32, #tpu.memory_space<vmem>>, vector<16x4xf32>
    %cst_20 = arith.constant dense<0.000000e+00> : vector<8x4xf32>
    %23 = tpu.matmul %21, %22, %cst_20 {dimension_numbers = #tpu.dot_dimension_numbers<[1], [0], [0], [1], [0, 0, 1, 1], [], []>} : vector<8x16xf32>, vector<16x4xf32>, vector<8x4xf32> -> vector<8x4xf32>
    %c0_21 = arith.constant 0 : index
    %c0_22 = arith.constant 0 : index
    %24 = vector.load %arg9[%c0_21, %c0_22] : memref<1x4xf32, #tpu.memory_space<vmem>>, vector<1x4xf32>
    %25 = vector.broadcast %24 : vector<1x4xf32> to vector<8x4xf32>
    %26 = arith.addf %23, %25 : vector<8x4xf32>
    %cst_23 = arith.constant dense<0xFF800000> : vector<8xf32>
    %27 = vector.multi_reduction <maximumf>, %26, %cst_23 [1] : vector<8x4xf32> to vector<8xf32>
    %28 = vector.shape_cast %27 : vector<8xf32> to vector<8x1xf32>
    %29 = vector.broadcast %28 : vector<8x1xf32> to vector<8x4xf32>
    %30 = arith.subf %26, %29 : vector<8x4xf32>
    %31 = math.exp %30 : vector<8x4xf32>
    %cst_24 = arith.constant dense<0.000000e+00> : vector<8xf32>
    %32 = vector.multi_reduction <add>, %31, %cst_24 [1] : vector<8x4xf32> to vector<8xf32>
    %33 = vector.shape_cast %32 : vector<8xf32> to vector<8x1xf32>
    %34 = math.log %33 : vector<8x1xf32>
    %35 = vector.broadcast %34 : vector<8x1xf32> to vector<8x4xf32>
    %36 = arith.subf %30, %35 : vector<8x4xf32>
    %c0_25 = arith.constant 0 : index
    %c0_26 = arith.constant 0 : index
    %37 = vector.load %arg10[%c0_25, %c0_26] : memref<8x4xf32, #tpu.memory_space<vmem>>, vector<8x4xf32>
    tpu.vector_store %arg10[%c0_25, %c0_26], %36 {strides = array<i32>} : memref<8x4xf32, #tpu.memory_space<vmem>>, vector<8x4xf32>,
    return
  }
  func.func @transform_0(%arg0: i32) -> (i32, i32) {
    %c0_i32 = arith.constant 0 : i32
    %c0_i32_0 = arith.constant 0 : i32
    return %arg0, %c0_i32 : i32, i32
  }
  func.func @transform_1(%arg0: i32) -> (i32, i32) {
    %c0_i32 = arith.constant 0 : i32
    %c0_i32_0 = arith.constant 0 : i32
    %c0_i32_1 = arith.constant 0 : i32
    return %c0_i32, %c0_i32_0 : i32, i32
  }
  func.func @transform_2(%arg0: i32) -> (i32, i32) {
    %c0_i32 = arith.constant 0 : i32
    %c0_i32_0 = arith.constant 0 : i32
    %c0_i32_1 = arith.constant 0 : i32
    return %c0_i32, %c0_i32_0 : i32, i32
  }
  func.func @transform_3(%arg0: i32) -> (i32, i32) {
    %c0_i32 = arith.constant 0 : i32
    %c0_i32_0 = arith.constant 0 : i32
    %c0_i32_1 = arith.constant 0 : i32
    return %c0_i32, %c0_i32_0 : i32, i32
  }
  func.func @transform_4(%arg0: i32) -> (i32, i32) {
    %c0_i32 = arith.constant 0 : i32
    %c0_i32_0 = arith.constant 0 : i32
    %c0_i32_1 = arith.constant 0 : i32
    return %c0_i32, %c0_i32_0 : i32, i32
  }
  func.func @transform_5(%arg0: i32) -> (i32, i32) {
    %c0_i32 = arith.constant 0 : i32
    %c0_i32_0 = arith.constant 0 : i32
    %c0_i32_1 = arith.constant 0 : i32
    return %c0_i32, %c0_i32_0 : i32, i32
  }
  func.func @transform_6(%arg0: i32) -> (i32, i32) {
    %c0_i32 = arith.constant 0 : i32
    %c0_i32_0 = arith.constant 0 : i32
    %c0_i32_1 = arith.constant 0 : i32
    return %c0_i32, %c0_i32_0 : i32, i32
  }
  func.func @transform_7(%arg0: i32) -> (i32, i32) {
    %c0_i32 = arith.constant 0 : i32
    %c0_i32_0 = arith.constant 0 : i32
    %c0_i32_1 = arith.constant 0 : i32
    return %c0_i32, %c0_i32_0 : i32, i32
  }
  func.func @transform_8(%arg0: i32) -> (i32, i32) {
    %c0_i32 = arith.constant 0 : i32
    %c0_i32_0 = arith.constant 0 : i32
    %c0_i32_1 = arith.constant 0 : i32
    return %c0_i32, %c0_i32_0 : i32, i32
  }
  func.func @transform_9(%arg0: i32) -> (i32, i32) {
    %c0_i32 = arith.constant 0 : i32
    %c0_i32_0 = arith.constant 0 : i32
    return %arg0, %c0_i32 : i32, i32
  }
}

</mosaic_0001>

<bundles_post_ra>
// kernel: reinforce_forward.1
= control target key start
LH: loop header
LB: loop body
LE: loop exit
PB: predicated region body
PF: predicated region fallthrough
CT: control target
= control target key end

     0   :  { %14 = vsyncpa [#allocation3], 0  ;;  %s738_s0 = inlined_call_operand.vmem [shape: f32[2,8], index: 0, kind: input, shape index: {}]   ;;  %s739_s1 = inlined_call_operand.hbm [shape: f32[8,16], index: 1, kind: input, shape index: {}]   ;;  %s740_s2 = inlined_call_operand.hbm [shape: f32[1,16], index: 2, kind: input, shape index: {}]   ;;  %s741_s3 = inlined_call_operand.vmem [shape: f32[16,16], index: 3, kind: input, shape index: {}]   ;;  %s742_s4 = inlined_call_operand.hbm [shape: f32[1,16], index: 4, kind: input, shape index: {}]   ;;  %s743_s5 = inlined_call_operand.vmem [shape: f32[16,16], index: 5, kind: input, shape index: {}]   ;;  %s744_s6 = inlined_call_operand.vmem [shape: f32[1,16], index: 6, kind: input, shape index: {}]   ;;  %s745_s7 = inlined_call_operand.vmem [shape: f32[16,4], index: 7, kind: input, shape index: {}]   ;;  %s746_s8 = inlined_call_operand.vmem [shape: f32[1,4], index: 8, kind: input, shape index: {}]   ;;  %s747_s9 = inlined_call_operand.hbm [shape: f32[2,4], index: 9, kind: output, shape index: {}]  }
   0x1   :  { %15 = vsyncpa [#allocation6], 0 }
   0x2   :  { %16 = vsyncpa [#allocation4], 0  ;;  %s594_s30 = smov [#allocation5]   ;;  %s595_s11 = smov [#allocation2]  }
   0x3   :  { %s35_s10 = sshll.u32 %s594_s30, 4  ;;  %s25_s12 = sshll.u32 %s595_s11, 4  ;;  %s36_s10 = int_to_ptr.vmem [resolvable:$true] %s35_s10  ;;  %s26_s12 = int_to_ptr.vmem [resolvable:$true] %s25_s12 }
   0x4   :  { %s500_s15 = scalar_lea.hbm %s740_s2, 16 }
   0x5   :  { %p501_p0 = scmp.ne.s32.totalorder %s740_s2, %s500_s15  ;;  %p504_p1 = scmp.lt.u32.totalorder %s500_s15, %s740_s2 }
   0x7   :  { %p506_p2 = pnand %p504_p1, %p501_p0 }
   0x9   :  { %509 = shalt.err (!%p506_p2)
}
   0xa   :  { %s510_s20 = scalar_lea.vmem %s36_s10, 16  ;;  %s514_s21 = scalar_lea.vmem %s36_s10, 32 }
   0xb   :  { %p511_p3 = scmp.ne.s32.totalorder %s36_s10, %s510_s20  ;;  %p515_p4 = scmp.lt.s32.totalorder %s36_s10, %s36_s10 }
   0xc   :  { %p516_p5 = scmp.lt.s32.totalorder %s514_s21, %s510_s20 }
   0xe   :  { %p517_p6 = por %p516_p5, %p515_p4 }
  0x10   :  { %p518_p7 = pnand %p517_p6, %p511_p3 }
  0x12   :  { %521 = shalt.err (!%p518_p7)
}
  0x13   :  { %38 = dma.hbm_to_vmem [thread:$0]  %s740_s2, 16, %s36_s10, [#allocation6]  }
  0x14   :  { %s522_s26 = scalar_lea.hbm %s739_s1, 128 }
  0x15   :  { %p523_p8 = scmp.ne.s32.totalorder %s739_s1, %s522_s26  ;;  %p526_p9 = scmp.lt.u32.totalorder %s522_s26, %s739_s1 }
  0x17   :  { %p528_p10 = pnand %p526_p9, %p523_p8 }
  0x19   :  { %531 = shalt.err (!%p528_p10)
}
  0x1a   :  { %s532_s11 = scalar_lea.vmem %s26_s12, 128  ;;  %p537_p12 = scmp.lt.s32.totalorder %s26_s12, %s26_s12 }
  0x1b   :  { %p533_p11 = scmp.ne.s32.totalorder %s26_s12, %s532_s11  ;;  %p538_p13 = scmp.lt.s32.totalorder %s532_s11, %s532_s11 }
  0x1d   :  { %p539_p0 = por %p538_p13, %p537_p12 }
  0x1f   :  { %p540_p1 = pnand %p539_p0, %p533_p11 }
  0x21   :  { %543 = shalt.err (!%p540_p1)
}
  0x22   :  { %28 = dma.hbm_to_vmem [thread:$0]  %s739_s1, 128, %s26_s12, [#allocation3]  }
  0x23   :  { %s596_s13 = smov [#allocation7]   ;;  %s544_s17 = scalar_lea.hbm %s742_s4, 16 }
  0x24   :  { %s47_s14 = sshll.u32 %s596_s13, 4  ;;  %p545_p2 = scmp.ne.s32.totalorder %s742_s4, %s544_s17  ;;  %s48_s14 = int_to_ptr.vmem [resolvable:$true] %s47_s14 }
  0x25   :  { %p548_p3 = scmp.lt.u32.totalorder %s544_s17, %s742_s4 }
  0x27   :  { %p550_p4 = pnand %p548_p3, %p545_p2 }
  0x29   :  { %553 = shalt.err (!%p550_p4)
}
  0x2a   :  { %s554_s22 = scalar_lea.vmem %s48_s14, 16  ;;  %s558_s1 = scalar_lea.vmem %s48_s14, 32 }
  0x2b   :  { %p555_p5 = scmp.ne.s32.totalorder %s48_s14, %s554_s22  ;;  %p559_p6 = scmp.lt.s32.totalorder %s48_s14, %s48_s14 }
  0x2c   :  { %p560_p7 = scmp.lt.s32.totalorder %s558_s1, %s554_s22 }
  0x2e   :  { %p561_p8 = por %p560_p7, %p559_p6 }
  0x30   :  { %p562_p9 = pnand %p561_p8, %p555_p5 }
  0x32   :  { %565 = shalt.err (!%p562_p9)
}
  0x33   :  { %50 = dma.hbm_to_vmem [thread:$0]  %s742_s4, 16, %s48_s14, [#allocation6]  }
  0x34   :  { %588 = dma.done.wait [#allocation3], 128  }
  0x35   :  { %589 = vsyncadd [#allocation3], 4294967168 }
  0x36   :  { %590 = dma.done.wait [#allocation6], 32  }
  0x37   :  { %591 = vsyncadd [#allocation6], 4294967264  ;;  %v597_v0 = vmov 0.0   ;;  %vm598_vm0 = vmmov 0   ;;  %vm77_vm1 = vcmask 64512   ;;  %v69_v1 = vld [vmem:[#allocation2] sm:$0xff] }
  0x38   :  { %452 = vmatprep.subr.mxu0 %v597_v0  ;;  %454 = vmatprep.mubr.msk.f32.mxu0 %vm598_vm0, %v597_v0  ;;  %v68_v2 = vld [vmem:[%s738_s0] sm:$0xff]  ;;  %v153_v4 = vld [vmem:[%s741_s3 + $0x8] sm:$0xff]  ;;  %v599_v6 = vmov 0.0|0.0   ;;  %vm161_vm2 = vcmask 130048   ;;  %vm401_vm3 = vcmask 31744  }
  0x39   :  { %461 = vmatprep.mubr.msk.f32.mxu1 %vm598_vm0, %v597_v0  ;;  %453 = vmatpush3.msra.mxu0 %v69_v1  ;;  %v152_v3 = vld [vmem:[%s741_s3] sm:$0xff]  ;;  %v433_v7 = vld [vmem:[#allocation5] ss:$0 sm:$0xff]  ;;  %v435_v15 = vld [vmem:[#allocation7] ss:$0 sm:$0xff] }
  0x3a   :  { %455 = vmatmul.mubr.msk.f32.vlgmr.msra.gmra.mrb[0].mxu0 %vm77_vm1, %v68_v2  ;;  %v479_v5 = vpack.c.bf16 %v153_v4, %v152_v3  ;;  %478 = vmatprep.subr.bf16.mxu1 %v599_v6  ;;  %v236_v12 = vld [vmem:[%s743_s5] sm:$0xff]  ;;  %v237_v13 = vld [vmem:[%s743_s5 + $0x8] sm:$0xff] }
  0x3b   :  { %468 = vmatprep.mubr.msk.f32.mxu0 %vm598_vm0, %v597_v0  ;;  %481 = vmatprep.subr.bf16.mxu0 %v599_v6  ;;  %v482_v14 = vpack.c.bf16 %v237_v13, %v236_v12  ;;  %v319_v20 = vld [vmem:[%s745_s7] sm:$0xff]  ;;  %v320_v21 = vld [vmem:[%s745_s7 + $0x8] sm:$0xff] }
  0x3c   :  { %480 = vmatpush3.bf16.msra.mxu1 %v479_v5  ;;  %v485_v22 = vpack.c.bf16 %v320_v21, %v319_v20  ;;  %v437_v23 = vld [vmem:[%s744_s6] ss:$0 sm:$0xff] }
  0x3d   :  { %484 = vmatprep.subr.bf16.mxu1 %v599_v6  ;;  %483 = vmatpush3.bf16.msra.mxu0 %v482_v14  ;;  %v439_v28 = vld [vmem:[%s746_s8] ss:$0 sm:$0xff] }
 0x10d   :  { %v147_v8 = vpop.f32.mrb[0].mxu0 }
 0x10e   :  { %v148_v9 = vadd.f32 %v433_v7, %v147_v8  ;;  %v456_v10 = vpop.f32.mrb[1].mxu0 }
 0x110   :  { %v151_v11 = vmax.f32 %v148_v9, 0.0 }
 0x112   :  { %462 = vmatmul.mubr.msk.f32.vlgmr.msra.gmra.mrb[0].mxu1 %vm161_vm2, %v151_v11 }
 0x113   :  { %475 = vmatprep.mubr.msk.f32.mxu1 %vm598_vm0, %v597_v0  ;;  %486 = vmatpush3.bf16.msra.mxu1 %v485_v22 }
 0x1e5   :  { %v231_v16 = vpop.f32.mrb[0].mxu1 }
 0x1e6   :  { %v232_v17 = vadd.f32 %v435_v15, %v231_v16  ;;  %v463_v18 = vpop.f32.mrb[1].mxu1 }
 0x1e8   :  { %v235_v19 = vmax.f32 %v232_v17, 0.0 }
 0x1ea   :  { %469 = vmatmul.mubr.msk.f32.vlgmr.msra.gmra.mrb[2].mxu0 %vm161_vm2, %v235_v19 }
 0x2bd   :  { %v314_v24 = vpop.f32.mrb[2].mxu0 }
 0x2be   :  { %v315_v25 = vadd.f32 %v437_v23, %v314_v24  ;;  %v470_v26 = vpop.f32.mrb[3].mxu0 }
 0x2c0   :  { %v318_v27 = vmax.f32 %v315_v25, 0.0 }
 0x2c2   :  { %476 = vmatmul.mubr.msk.f32.vlgmr.msra.gmra.mrb[2].mxu1 %vm161_vm2, %v318_v27 }
 0x395   :  { %v397_v29 = vpop.f32.mrb[2].mxu1 }
 0x396   :  { %v398_v30 = vadd.f32 %v439_v28, %v397_v29  ;;  %v477_v31 = vpop.f32.mrb[3].mxu1 }
 0x398   :  { %v402_v32 = vsel %vm401_vm3, %v398_v30, -inf }
 0x399   :  { %403 = vmax.xlane.f32.xlu0 %v402_v32 }
 0x426   :  { %v404_v33 = vpop.xlane.xlu0 %403 }
 0x427   :  { %v405_v34 = vsub.f32 %v398_v30, %v404_v33 }
 0x429   :  { %v406_v35 = vmul.f32 1.442695, %v405_v34 }
 0x42b   :  { %496 = vpow2.f32 %v406_v35 }
 0x435   :  { %v497_v36 = vpop.eup %496 }
 0x436   :  { %v408_v37 = vsel %vm401_vm3, %v497_v36, 0.0 }
 0x437   :  { %409 = vadd.xlane.f32.xlu0 %v408_v37 }
 0x4c4   :  { %v410_v38 = vpop.xlane.xlu0 %409 }
 0x4c5   :  { %498 = vlog2.f32 %v410_v38 }
 0x4cf   :  { %v499_v39 = vpop.eup %498 }
 0x4d0   :  { %v412_v40 = vmul.f32 0.6931472, %v499_v39 }
 0x4d2   :  { %v413_v41 = vsub.f32 %v405_v34, %v412_v40 }
 0x4d4   :  { %414 = vst.msk [vmem:[#allocation8] sm:$0xff] %vm401_vm3, %v413_v41 }
 0x4d5   :  { %419 = vsyncadd [#allocation4], 96  ;;  %s600_s6 = smov [#allocation8]  }
 0x4d6   :  { %s420_s7 = sshll.u32 %s600_s6, 4  ;;  %s421_s7 = int_to_ptr.vmem [resolvable:$true] %s420_s7 }
 0x4d7   :  { %s566_s8 = scalar_lea.vmem %s421_s7, 32  ;;  %s570_s17 = scalar_lea.vmem %s421_s7, 128 }
 0x4d8   :  { %p567_p10 = scmp.ne.s32.totalorder %s421_s7, %s566_s8  ;;  %p571_p11 = scmp.lt.s32.totalorder %s421_s7, %s421_s7 }
 0x4d9   :  { %p572_p12 = scmp.lt.s32.totalorder %s570_s17, %s566_s8 }
 0x4db   :  { %p573_p13 = por %p572_p12, %p571_p11 }
 0x4dd   :  { %p574_p0 = pnand %p573_p13, %p567_p10 }
 0x4df   :  { %577 = shalt.err (!%p574_p0)
}
 0x4e0   :  { %s578_s20 = scalar_lea.hbm %s747_s9, 32 }
 0x4e1   :  { %p579_p1 = scmp.ne.s32.totalorder %s747_s9, %s578_s20  ;;  %p582_p2 = scmp.lt.u32.totalorder %s578_s20, %s747_s9 }
 0x4e3   :  { %p584_p3 = pnand %p582_p2, %p579_p1 }
 0x4e5   :  { %587 = shalt.err (!%p584_p3)
}
 0x4e6   :  { %s601_s23 = smov 32   ;;  %s602_s24 = smov 2  }
 0x4e7   :  { %426 = dma.vmem_to_hbm [thread:$0]  %s421_s7, 32, %s747_s9, [#allocation4], %s601_s23, %s601_s23, %s602_s24  }
 0x4e8   :  { %592 = dma.done.wait [#allocation4], 128  }
 0x4e9   :  { %593 = vsyncadd [#allocation4], 4294967168 }
 0x4ea   :  { %430 = vsyncpa [#allocation3], 1 }
 0x4eb   :  { %431 = vsyncpa [#allocation6], 1 }
 0x4ec   :  { %432 = vsyncpa [#allocation4], 1 }

</bundles_post_ra>
